<compile_context>
chip_gen: v7x
topology: tpu7x:2x2x1
jax: 0.10.0
libtpu: 0.0.40
codegen_flags: <defaults>
</compile_context>

<pallas_src>
import jax
import jax.numpy as jnp
from jax.experimental import pallas as pl
from jax.experimental.pallas import tpu as pltpu


def _round_up(n, m):
    return ((n + m - 1) // m) * m


def cfc_kernel(x_ref, wW_ref, wU_ref, bias_ref, h_ref, pre_ref):
    """One time chunk of the CFC recurrence.

    x_ref    : (Tc*Bp, D)   time-major input rows for this chunk
    wW_ref   : (D, Hp)      input projection weight (zero-padded)
    wU_ref   : (Hp, Hp)     recurrent weight (zero-padded, grid-invariant)
    bias_ref : (1, Hp)      fused bias bW + bU (zero-padded)
    h_ref    : (Bp, Hp)     resident output block = carried hidden state
    pre_ref  : (Tc*Bp, Hp)  VMEM scratch for the chunk's input projection
    """
    chunk = pl.program_id(0)

    @pl.when(chunk == 0)
    def _init():
        h_ref[...] = jnp.zeros_like(h_ref)

    # Whole-chunk input projection: independent across t -> one big MXU matmul
    # off the serial critical path; bias is broadcast once per chunk.
    pre_ref[...] = (
        jnp.dot(x_ref[...], wW_ref[...], preferred_element_type=jnp.float32)
        + bias_ref[...]
    )

    wU = wU_ref[...]                       # hoisted out of the loop
    Bp = h_ref.shape[0]
    Tc = pre_ref.shape[0] // Bp

    def step(t, h):
        # Serial critical path: one (Bp,Hp)@(Hp,Hp) MXU matmul + VPU add + tanh.
        row = pl.multiple_of(t * Bp, Bp)
        pre_t = pre_ref[pl.ds(row, Bp), :]
        return jnp.tanh(pre_t + jnp.dot(h, wU, preferred_element_type=jnp.float32))

    h_ref[...] = jax.lax.fori_loop(0, Tc, step, h_ref[...], unroll=min(Tc, 8))


def cfc_forward(x, params, *, time_chunk=None):
    """x: (B, T, D) float32.  Returns (B,) like out.squeeze() in PyTorch."""
    wW, bW, wU, bU, wV, bV = params
    B, T, D = x.shape
    H = wW.shape[1]
    f32 = jnp.float32

    LANE, SUB = 128, 8
    Hp = _round_up(max(H, LANE), LANE)     # lane-dense hidden dim
    Bp = _round_up(max(B, SUB), SUB)       # sublane-aligned batch

    # Time chunking: bounded VMEM at large T; chunk must divide T (time padding
    # would change the recurrence because of the fused bias).
    if time_chunk is None:
        time_chunk = T
        if T > 64:
            for c in (64, 32, 16, 8, 4, 2, 1):
                if T % c == 0:
                    time_chunk = c
                    break
    if T % time_chunk != 0:
        raise ValueError("time_chunk must divide T")
    Tc = time_chunk
    n_chunks = T // Tc

    # Zero-pad parameters.  Padded lanes of h stay exactly 0 through the
    # recurrence (wW/wU padded columns and the padded bias are 0), so the
    # padding is numerically exact.
    wW_p = jnp.zeros((D, Hp), f32).at[:, :H].set(wW.astype(f32))
    wU_p = jnp.zeros((Hp, Hp), f32).at[:H, :H].set(wU.astype(f32))
    bias_p = jnp.zeros((1, Hp), f32).at[:, :H].set((bW + bU).astype(f32))

    # Batch-pad and flatten time-major: rows [t*Bp, (t+1)*Bp) hold timestep t.
    x_p = jnp.zeros((Bp, T, D), f32).at[:B].set(x.astype(f32))
    x_tm = jnp.transpose(x_p, (1, 0, 2)).reshape(T * Bp, D)

    # VMEM budget from the actual tiles (double-buffered x chunk + weights +
    # resident h + pre scratch), with headroom; floor 16 MiB, cap 48 MiB so we
    # never crowd v7x's 64 MiB physical VMEM (raise toward 128 MiB on v5e/v6e
    # if you want bigger chunks).
    vmem_bytes = 4 * (
        2 * Tc * Bp * D        # x chunk (double-buffered)
        + 2 * D * Hp           # wW
        + 2 * Hp * Hp          # wU (worst case: double-buffered)
        + 2 * Hp               # bias
        + Bp * Hp              # resident h output
        + Tc * Bp * Hp         # pre scratch
    )
    vmem_limit = min(max(int(1.5 * vmem_bytes) + (4 << 20), 16 << 20), 48 << 20)

    # wU is grid-invariant; when the time grid actually pipelines, single-buffer
    # it to halve its VMEM footprint (per perf review).
    wU_spec = pl.BlockSpec((Hp, Hp), lambda t: (0, 0))
    if n_chunks > 1:
        wU_spec = pl.BlockSpec((Hp, Hp), lambda t: (0, 0),
                               pipeline_mode=pl.Buffered(1))

    hT = pl.pallas_call(
        cfc_kernel,
        out_shape=jax.ShapeDtypeStruct((Bp, Hp), f32),
        grid_spec=pltpu.PrefetchScalarGridSpec(
            num_scalar_prefetch=0,
            grid=(n_chunks,),                                   # time chunks only
            in_specs=[
                pl.BlockSpec((Tc * Bp, D), lambda t: (t, 0)),   # x chunk
                pl.BlockSpec((D, Hp), lambda t: (0, 0)),        # wW
                wU_spec,                                        # wU
                pl.BlockSpec((1, Hp), lambda t: (0, 0)),        # fused bias
            ],
            out_specs=pl.BlockSpec((Bp, Hp), lambda t: (0, 0)),  # resident h
            scratch_shapes=[pltpu.VMEM((Tc * Bp, Hp), f32)],     # pre scratch
        ),
        compiler_params=pltpu.CompilerParams(
            dimension_semantics=("arbitrary",),   # serial recurrence over time
            vmem_limit_bytes=vmem_limit,
        ),
    )(x_tm, wW_p, wU_p, bias_p)

    # Output projection in the wrapper keeps the kernel store lane-dense.
    out = hT[:B, :H] @ wV + bV                               # (B, 1)
    return out[:, 0]                                         # squeeze -> (B,)


def init_params(key, input_size, hidden_size):
    """Deterministic synthetic parameters matching nn.Linear shapes
    (stored pre-transposed as (in, out) for x @ W style matmuls)."""
    ks = jax.random.split(key, 6)
    wW = jax.random.normal(ks[0], (input_size, hidden_size), jnp.float32) * 0.2
    bW = jax.random.normal(ks[1], (1, hidden_size), jnp.float32) * 0.1
    wU = jax.random.normal(ks[2], (hidden_size, hidden_size), jnp.float32) * 0.2
    bU = jax.random.normal(ks[3], (1, hidden_size), jnp.float32) * 0.1
    wV = jax.random.normal(ks[4], (hidden_size, 1), jnp.float32) * 0.2
    bV = jax.random.normal(ks[5], (1, 1), jnp.float32) * 0.1
    return (wW, bW, wU, bU, wV, bV)


def cfc_reference(x, params):
    """Pure-JAX reference mirroring the PyTorch loop."""
    wW, bW, wU, bU, wV, bV = params
    B = x.shape[0]
    H = wW.shape[1]

    def step(h, xt):
        h = jnp.tanh(xt @ wW + bW + h @ wU + bU)
        return h, None

    h0 = jnp.zeros((B, H), jnp.float32)
    hT, _ = jax.lax.scan(step, h0, jnp.transpose(x, (1, 0, 2)))
    return (hT @ wV + bV)[:, 0]


if __name__ == "__main__":
    batch, seq, input_size, hidden_size = 4, 8, 4, 32

    key = jax.random.PRNGKey(0)
    kx, kp = jax.random.split(key)
    x = jax.random.normal(kx, (batch, seq, input_size), jnp.float32)
    params = init_params(kp, input_size, hidden_size)

    out = jax.block_until_ready(cfc_forward(x, params))
    ref = jax.block_until_ready(cfc_reference(x, params))

    assert out.shape == (batch,), out.shape
    assert jnp.allclose(out, ref, atol=1e-4, rtol=1e-4), (out, ref)
    print("KERNEL_OK")
</pallas_src>

<mosaic_0001>
module attributes {stable_mosaic.version = 11 : i64} {
  func.func @cfc_kernel(%arg0: i32, %arg1: memref<64x4xf32, #tpu.memory_space<vmem>>, %arg2: memref<4x128xf32, #tpu.memory_space<vmem>>, %arg3: memref<128x128xf32, #tpu.memory_space<vmem>>, %arg4: memref<1x128xf32, #tpu.memory_space<vmem>>, %arg5: memref<8x128xf32, #tpu.memory_space<vmem>>, %arg6: memref<64x128xf32, #tpu.memory_space<vmem>>) attributes {dimension_semantics = [#tpu.dimension_semantics<arbitrary>], iteration_bounds = array<i64: 1>, scalar_prefetch = 0 : i64, scratch_operands = 1 : i64, tpu.core_type = #tpu.core_type<tc>, window_params = [{transform_indices = @transform_0, window_bounds = array<i64: 64, 4>}, {pipeline_mode = #tpu.pipeline_mode<synchronous>, transform_indices = @transform_1, window_bounds = array<i64: 4, 128>}, {pipeline_mode = #tpu.pipeline_mode<synchronous>, transform_indices = @transform_2, window_bounds = array<i64: 128, 128>}, {pipeline_mode = #tpu.pipeline_mode<synchronous>, transform_indices = @transform_3, window_bounds = array<i64: 1, 128>}, {pipeline_mode = #tpu.pipeline_mode<synchronous>, transform_indices = @transform_4, window_bounds = array<i64: 8, 128>}]} {
    %c0_i32 = arith.constant 0 : i32
    %0 = arith.cmpi eq, %arg0, %c0_i32 : i32
    %1 = arith.extui %0 : i1 to i32
    %c0_i32_0 = arith.constant 0 : i32
    %2 = arith.cmpi ne, %1, %c0_i32_0 : i32
    scf.if %2 {
      %cst_39 = arith.constant 0.000000e+00 : f32
      %69 = vector.broadcast %cst_39 : f32 to vector<8x128xf32>
      %c0_40 = arith.constant 0 : index
      %c0_41 = arith.constant 0 : index
      %70 = vector.load %arg5[%c0_40, %c0_41] : memref<8x128xf32, #tpu.memory_space<vmem>>, vector<8x128xf32>
      tpu.vector_store %arg5[%c0_40, %c0_41], %69 {strides = array<i32>} : memref<8x128xf32, #tpu.memory_space<vmem>>, vector<8x128xf32>,
    } else {
    }
    %c0 = arith.constant 0 : index
    %c0_1 = arith.constant 0 : index
    %3 = vector.load %arg1[%c0, %c0_1] : memref<64x4xf32, #tpu.memory_space<vmem>>, vector<64x4xf32>
    %c0_2 = arith.constant 0 : index
    %c0_3 = arith.constant 0 : index
    %4 = vector.load %arg2[%c0_2, %c0_3] : memref<4x128xf32, #tpu.memory_space<vmem>>, vector<4x128xf32>
    %cst = arith.constant dense<0.000000e+00> : vector<64x128xf32>
    %5 = tpu.matmul %3, %4, %cst {dimension_numbers = #tpu.dot_dimension_numbers<[1], [0], [0], [1], [0, 0, 1, 1], [], []>} : vector<64x4xf32>, vector<4x128xf32>, vector<64x128xf32> -> vector<64x128xf32>
    %c0_4 = arith.constant 0 : index
    %c0_5 = arith.constant 0 : index
    %6 = vector.load %arg4[%c0_4, %c0_5] : memref<1x128xf32, #tpu.memory_space<vmem>>, vector<1x128xf32>
    %7 = vector.broadcast %6 : vector<1x128xf32> to vector<64x128xf32>
    %8 = arith.addf %5, %7 : vector<64x128xf32>
    %c0_6 = arith.constant 0 : index
    %c0_7 = arith.constant 0 : index
    %9 = vector.load %arg6[%c0_6, %c0_7] : memref<64x128xf32, #tpu.memory_space<vmem>>, vector<64x128xf32>
    tpu.vector_store %arg6[%c0_6, %c0_7], %8 {strides = array<i32>} : memref<64x128xf32, #tpu.memory_space<vmem>>, vector<64x128xf32>,
    %c0_8 = arith.constant 0 : index
    %c0_9 = arith.constant 0 : index
    %10 = vector.load %arg3[%c0_8, %c0_9] : memref<128x128xf32, #tpu.memory_space<vmem>>, vector<128x128xf32>
    %c0_10 = arith.constant 0 : index
    %c0_11 = arith.constant 0 : index
    %11 = vector.load %arg5[%c0_10, %c0_11] : memref<8x128xf32, #tpu.memory_space<vmem>>, vector<8x128xf32>
    %c0_i32_12 = arith.constant 0 : i32
    %c8_i32 = arith.constant 8 : i32
    %12 = arith.muli %c0_i32_12, %c8_i32 : i32
    %13 = tpu.assume_multiple %12, 8 : i32
    %14 = arith.index_cast %13 : i32 to index
    %c0_13 = arith.constant 0 : index
    %15 = vector.load %arg6[%14, %c0_13] : memref<64x128xf32, #tpu.memory_space<vmem>>, vector<8x128xf32>
    %cst_14 = arith.constant dense<0.000000e+00> : vector<8x128xf32>
    %16 = tpu.matmul %11, %10, %cst_14 {dimension_numbers = #tpu.dot_dimension_numbers<[1], [0], [0], [1], [0, 0, 1, 1], [], []>} : vector<8x128xf32>, vector<128x128xf32>, vector<8x128xf32> -> vector<8x128xf32>
    %17 = arith.addf %15, %16 : vector<8x128xf32>
    %18 = math.tanh %17 : vector<8x128xf32>
    %c1_i32 = arith.constant 1 : i32
    %c8_i32_15 = arith.constant 8 : i32
    %19 = arith.muli %c1_i32, %c8_i32_15 : i32
    %20 = tpu.assume_multiple %19, 8 : i32
    %21 = arith.index_cast %20 : i32 to index
    %c0_16 = arith.constant 0 : index
    %22 = vector.load %arg6[%21, %c0_16] : memref<64x128xf32, #tpu.memory_space<vmem>>, vector<8x128xf32>
    %cst_17 = arith.constant dense<0.000000e+00> : vector<8x128xf32>
    %23 = tpu.matmul %18, %10, %cst_17 {dimension_numbers = #tpu.dot_dimension_numbers<[1], [0], [0], [1], [0, 0, 1, 1], [], []>} : vector<8x128xf32>, vector<128x128xf32>, vector<8x128xf32> -> vector<8x128xf32>
    %24 = arith.addf %22, %23 : vector<8x128xf32>
    %25 = math.tanh %24 : vector<8x128xf32>
    %c2_i32 = arith.constant 2 : i32
    %c8_i32_18 = arith.constant 8 : i32
    %26 = arith.muli %c2_i32, %c8_i32_18 : i32
    %27 = tpu.assume_multiple %26, 8 : i32
    %28 = arith.index_cast %27 : i32 to index
    %c0_19 = arith.constant 0 : index
    %29 = vector.load %arg6[%28, %c0_19] : memref<64x128xf32, #tpu.memory_space<vmem>>, vector<8x128xf32>
    %cst_20 = arith.constant dense<0.000000e+00> : vector<8x128xf32>
    %30 = tpu.matmul %25, %10, %cst_20 {dimension_numbers = #tpu.dot_dimension_numbers<[1], [0], [0], [1], [0, 0, 1, 1], [], []>} : vector<8x128xf32>, vector<128x128xf32>, vector<8x128xf32> -> vector<8x128xf32>
    %31 = arith.addf %29, %30 : vector<8x128xf32>
    %32 = math.tanh %31 : vector<8x128xf32>
    %c3_i32 = arith.constant 3 : i32
    %c8_i32_21 = arith.constant 8 : i32
    %33 = arith.muli %c3_i32, %c8_i32_21 : i32
    %34 = tpu.assume_multiple %33, 8 : i32
    %35 = arith.index_cast %34 : i32 to index
    %c0_22 = arith.constant 0 : index
    %36 = vector.load %arg6[%35, %c0_22] : memref<64x128xf32, #tpu.memory_space<vmem>>, vector<8x128xf32>
    %cst_23 = arith.constant dense<0.000000e+00> : vector<8x128xf32>
    %37 = tpu.matmul %32, %10, %cst_23 {dimension_numbers = #tpu.dot_dimension_numbers<[1], [0], [0], [1], [0, 0, 1, 1], [], []>} : vector<8x128xf32>, vector<128x128xf32>, vector<8x128xf32> -> vector<8x128xf32>
    %38 = arith.addf %36, %37 : vector<8x128xf32>
    %39 = math.tanh %38 : vector<8x128xf32>
    %c4_i32 = arith.constant 4 : i32
    %c8_i32_24 = arith.constant 8 : i32
    %40 = arith.muli %c4_i32, %c8_i32_24 : i32
    %41 = tpu.assume_multiple %40, 8 : i32
    %42 = arith.index_cast %41 : i32 to index
    %c0_25 = arith.constant 0 : index
    %43 = vector.load %arg6[%42, %c0_25] : memref<64x128xf32, #tpu.memory_space<vmem>>, vector<8x128xf32>
    %cst_26 = arith.constant dense<0.000000e+00> : vector<8x128xf32>
    %44 = tpu.matmul %39, %10, %cst_26 {dimension_numbers = #tpu.dot_dimension_numbers<[1], [0], [0], [1], [0, 0, 1, 1], [], []>} : vector<8x128xf32>, vector<128x128xf32>, vector<8x128xf32> -> vector<8x128xf32>
    %45 = arith.addf %43, %44 : vector<8x128xf32>
    %46 = math.tanh %45 : vector<8x128xf32>
    %c5_i32 = arith.constant 5 : i32
    %c8_i32_27 = arith.constant 8 : i32
    %47 = arith.muli %c5_i32, %c8_i32_27 : i32
    %48 = tpu.assume_multiple %47, 8 : i32
    %49 = arith.index_cast %48 : i32 to index
    %c0_28 = arith.constant 0 : index
    %50 = vector.load %arg6[%49, %c0_28] : memref<64x128xf32, #tpu.memory_space<vmem>>, vector<8x128xf32>
    %cst_29 = arith.constant dense<0.000000e+00> : vector<8x128xf32>
    %51 = tpu.matmul %46, %10, %cst_29 {dimension_numbers = #tpu.dot_dimension_numbers<[1], [0], [0], [1], [0, 0, 1, 1], [], []>} : vector<8x128xf32>, vector<128x128xf32>, vector<8x128xf32> -> vector<8x128xf32>
    %52 = arith.addf %50, %51 : vector<8x128xf32>
    %53 = math.tanh %52 : vector<8x128xf32>
    %c6_i32 = arith.constant 6 : i32
    %c8_i32_30 = arith.constant 8 : i32
    %54 = arith.muli %c6_i32, %c8_i32_30 : i32
    %55 = tpu.assume_multiple %54, 8 : i32
    %56 = arith.index_cast %55 : i32 to index
    %c0_31 = arith.constant 0 : index
    %57 = vector.load %arg6[%56, %c0_31] : memref<64x128xf32, #tpu.memory_space<vmem>>, vector<8x128xf32>
    %cst_32 = arith.constant dense<0.000000e+00> : vector<8x128xf32>
    %58 = tpu.matmul %53, %10, %cst_32 {dimension_numbers = #tpu.dot_dimension_numbers<[1], [0], [0], [1], [0, 0, 1, 1], [], []>} : vector<8x128xf32>, vector<128x128xf32>, vector<8x128xf32> -> vector<8x128xf32>
    %59 = arith.addf %57, %58 : vector<8x128xf32>
    %60 = math.tanh %59 : vector<8x128xf32>
    %c7_i32 = arith.constant 7 : i32
    %c8_i32_33 = arith.constant 8 : i32
    %61 = arith.muli %c7_i32, %c8_i32_33 : i32
    %62 = tpu.assume_multiple %61, 8 : i32
    %63 = arith.index_cast %62 : i32 to index
    %c0_34 = arith.constant 0 : index
    %64 = vector.load %arg6[%63, %c0_34] : memref<64x128xf32, #tpu.memory_space<vmem>>, vector<8x128xf32>
    %cst_35 = arith.constant dense<0.000000e+00> : vector<8x128xf32>
    %65 = tpu.matmul %60, %10, %cst_35 {dimension_numbers = #tpu.dot_dimension_numbers<[1], [0], [0], [1], [0, 0, 1, 1], [], []>} : vector<8x128xf32>, vector<128x128xf32>, vector<8x128xf32> -> vector<8x128xf32>
    %66 = arith.addf %64, %65 : vector<8x128xf32>
    %67 = math.tanh %66 : vector<8x128xf32>
    %c8_i32_36 = arith.constant 8 : i32
    %c0_37 = arith.constant 0 : index
    %c0_38 = arith.constant 0 : index
    %68 = vector.load %arg5[%c0_37, %c0_38] : memref<8x128xf32, #tpu.memory_space<vmem>>, vector<8x128xf32>
    tpu.vector_store %arg5[%c0_37, %c0_38], %67 {strides = array<i32>} : memref<8x128xf32, #tpu.memory_space<vmem>>, vector<8x128xf32>,
    return
  }
  func.func @transform_0(%arg0: i32) -> (i32, i32) {
    %c0_i32 = arith.constant 0 : i32
    %c0_i32_0 = arith.constant 0 : i32
    return %arg0, %c0_i32 : i32, i32
  }
  func.func @transform_1(%arg0: i32) -> (i32, i32) {
    %c0_i32 = arith.constant 0 : i32
    %c0_i32_0 = arith.constant 0 : i32
    %c0_i32_1 = arith.constant 0 : i32
    return %c0_i32, %c0_i32_0 : i32, i32
  }
  func.func @transform_2(%arg0: i32) -> (i32, i32) {
    %c0_i32 = arith.constant 0 : i32
    %c0_i32_0 = arith.constant 0 : i32
    %c0_i32_1 = arith.constant 0 : i32
    return %c0_i32, %c0_i32_0 : i32, i32
  }
  func.func @transform_3(%arg0: i32) -> (i32, i32) {
    %c0_i32 = arith.constant 0 : i32
    %c0_i32_0 = arith.constant 0 : i32
    %c0_i32_1 = arith.constant 0 : i32
    return %c0_i32, %c0_i32_0 : i32, i32
  }
  func.func @transform_4(%arg0: i32) -> (i32, i32) {
    %c0_i32 = arith.constant 0 : i32
    %c0_i32_0 = arith.constant 0 : i32
    %c0_i32_1 = arith.constant 0 : i32
    return %c0_i32, %c0_i32_0 : i32, i32
  }
}

</mosaic_0001>

<bundles_post_ra>
// kernel: tpu_custom_call.1
= control target key start
LH: loop header
LB: loop body
LE: loop exit
PB: predicated region body
PF: predicated region fallthrough
CT: control target
= control target key end

     0   :  { %9 = vsyncpa [#allocation4], 0  ;;  %s1808_s0 = inlined_call_operand.vmem [shape: f32[64,4], index: 0, kind: input, shape index: {}]   ;;  %s1809_s1 = inlined_call_operand.vmem [shape: f32[4,128], index: 1, kind: input, shape index: {}]   ;;  %s1810_s2 = inlined_call_operand.hbm [shape: f32[128,128], index: 2, kind: input, shape index: {}]   ;;  %s1811_s3 = inlined_call_operand.vmem [shape: f32[1,128], index: 3, kind: input, shape index: {}]   ;;  %s1812_s4 = inlined_call_operand.hbm [shape: f32[8,128], index: 4, kind: output, shape index: {}]  }
   0x1   :  { %10 = vsyncpa [#allocation5], 0  ;;  %s1531_s15 = smov [#allocation3]   ;;  %s1483_s19 = scalar_lea.hbm %s1810_s2, 2048 }
   0x2   :  { %s20_s16 = sshll.u32 %s1531_s15, 4  ;;  %p1484_p0 = scmp.ne.s32.totalorder %s1810_s2, %s1483_s19  ;;  %s21_s16 = int_to_ptr.vmem [resolvable:$true] %s20_s16 }
   0x3   :  { %p1487_p1 = scmp.lt.u32.totalorder %s1483_s19, %s1810_s2 }
   0x5   :  { %p1489_p2 = pnand %p1487_p1, %p1484_p0 }
   0x7   :  { %1492 = shalt.err (!%p1489_p2)
}
   0x8   :  { %s1493_s24 = scalar_lea.vmem %s21_s16, 2048  ;;  %p1498_p4 = scmp.lt.s32.totalorder %s21_s16, %s21_s16 }
   0x9   :  { %p1494_p3 = scmp.ne.s32.totalorder %s21_s16, %s1493_s24  ;;  %p1499_p5 = scmp.lt.s32.totalorder %s1493_s24, %s1493_s24 }
   0xb   :  { %p1500_p6 = por %p1499_p5, %p1498_p4 }
   0xd   :  { %p1501_p7 = pnand %p1500_p6, %p1494_p3 }
   0xf   :  { %1504 = shalt.err (!%p1501_p7)
}
  0x10   :  { %s1532_s25 = smov 128   ;;  %s1533_s26 = smov 8  }
  0x11   :  { %26 = dma.hbm_to_vmem [thread:$0]  %s1810_s2, 2048, %s21_s16, [#allocation4], %s1532_s25, %s1532_s25, %s1533_s26  }
  0x12   :  { %1527 = dma.done.wait [#allocation4], 2048  }
  0x13   :  { %1528 = vsyncadd [#allocation4], 4294965248  ;;  %v1534_v0 = vmov 0.0|0.0   ;;  %vm1535_vm0 = vmmov 0   ;;  %v1536_v1 = vmov 0.0   ;;  %v195_v2 = vld [vmem:[#allocation3] sm:$0xff] }
  0x14   :  { %1268 = vmatprep.subr.bf16.mxu1 %v1534_v0  ;;  %1020 = vmatprep.mubr.msk.f32.mxu1 %vm1535_vm0, %v1536_v1  ;;  %v196_v3 = vld [vmem:[#allocation3 + $0x8] sm:$0xff]  ;;  %v197_v4 = vld [vmem:[#allocation3 + $0x10] sm:$0xff]  ;;  %v198_v6 = vld [vmem:[#allocation3 + $0x18] sm:$0xff]  ;;  %vm78_vm1 = vcmask 1043456   ;;  %vm53_vm2 = vcmask 31744  }
  0x15   :  { %v1578_v5 = vpack.c.bf16 %v196_v3, %v195_v2  ;;  %v1581_v7 = vpack.c.bf16 %v198_v6, %v197_v4  ;;  %v199_v8 = vld [vmem:[#allocation3 + $0x20] sm:$0xff]  ;;  %v200_v9 = vld [vmem:[#allocation3 + $0x28] sm:$0xff]  ;;  %v201_v14 = vld [vmem:[#allocation3 + $0x30] sm:$0xff] }
  0x16   :  { %v45_v10 = vld [vmem:[%s1809_s1] sm:$0xf]  ;;  %v38_v12 = vld [vmem:[%s1808_s0 + $0x8] sm:$0xff]  ;;  %v1595_v13 = vpack.c.bf16 %v200_v9, %v199_v8  ;;  %v202_v15 = vld [vmem:[#allocation3 + $0x38] sm:$0xff] }
  0x17   :  { %1270 = vmatpush3.bf16.msra.mxu1 %v1578_v5  ;;  %974 = vmatprep.subr.msk.mxu0 %vm78_vm1, %v45_v10  ;;  %v37_v11 = vld [vmem:[%s1808_s0] sm:$0xff]  ;;  %v1603_v16 = vpack.c.bf16 %v202_v15, %v201_v14  ;;  %v204_v18 = vld [vmem:[#allocation3 + $0x48] sm:$0xff]  ;;  %v205_v20 = vld [vmem:[#allocation3 + $0x50] sm:$0xff] }
  0x18   :  { %1271 = vmatprep.subr.bf16.mxu1 %v1534_v0  ;;  %975 = vmatpush3.msk.msra.mxu0 %vm78_vm1, %v45_v10  ;;  %v203_v17 = vld [vmem:[#allocation3 + $0x40] sm:$0xff]  ;;  %v206_v21 = vld [vmem:[#allocation3 + $0x58] sm:$0xff]  ;;  %v208_v24 = vld [vmem:[#allocation3 + $0x68] sm:$0xff] }
  0x19   :  { %976 = vmatprep.mubr.msk.f32.mxu0 %vm53_vm2, %v37_v11  ;;  %1292 = vmatprep.subr.bf16.mxu0 %v1534_v0  ;;  %v1609_v19 = vpack.c.bf16 %v204_v18, %v203_v17  ;;  %v1615_v22 = vpack.c.bf16 %v206_v21, %v205_v20  ;;  %v207_v23 = vld [vmem:[#allocation3 + $0x60] sm:$0xff]  ;;  %v209_v26 = vld [vmem:[#allocation3 + $0x70] sm:$0xff]  ;;  %v210_v27 = vld [vmem:[#allocation3 + $0x78] sm:$0xff] }
  0x1a   :  { %977 = vmatmul.mubr.msk.f32.vlgmr.msra.gmra.mrb[0].mxu0 %vm53_vm2, %v38_v12  ;;  %v1621_v25 = vpack.c.bf16 %v208_v24, %v207_v23  ;;  %v1627_v28 = vpack.c.bf16 %v210_v27, %v209_v26  ;;  %v39_v29 = vld [vmem:[%s1808_s0 + $0x10] sm:$0xff]  ;;  %v40_v30 = vld [vmem:[%s1808_s0 + $0x18] sm:$0xff]  ;;  %v41_v31 = vld [vmem:[%s1808_s0 + $0x20] sm:$0xff] }
  0x1b   :  { %1273 = vmatpush3.bf16.msra.mxu1 %v1581_v7  ;;  %1294 = vmatpush3.bf16.msra.mxu0 %v1578_v5  ;;  %v42_v32 = vld [vmem:[%s1808_s0 + $0x28] sm:$0xff]  ;;  %v43_v33 = vld [vmem:[%s1808_s0 + $0x30] sm:$0xff]  ;;  %v44_v34 = vld [vmem:[%s1808_s0 + $0x38] sm:$0xff]  ;;  %s1537_s0 = smov [#allocation6]  }
  0x1c   :  { %1274 = vmatprep.subr.bf16.mxu1 %v1534_v0  ;;  %1295 = vmatprep.subr.bf16.mxu0 %v1534_v0  ;;  %v1686_v37 = vld [vmem:[%s1811_s3] ss:$0 sm:$0xff]  ;;  %s810_s3 = sshll.u32 %s1537_s0, 4  ;;  %s811_s3 = int_to_ptr.vmem [resolvable:$true] %s810_s3 }
  0x1d   :  { %979 = vmatprep.mubr.msk.f32.mxu0 %vm53_vm2, %v39_v29  ;;  %s1505_s21 = scalar_lea.vmem %s811_s3, 128  ;;  %p1510_p9 = scmp.lt.s32.totalorder %s811_s3, %s811_s3 }
  0x1e   :  { %980 = vmatmul.mubr.msk.f32.gmra.mrb[2].mxu0 %vm53_vm2, %v40_v30  ;;  %p1506_p8 = scmp.ne.s32.totalorder %s811_s3, %s1505_s21  ;;  %p1511_p10 = scmp.lt.s32.totalorder %s1505_s21, %s1505_s21 }
  0x1f   :  { %1276 = vmatpush3.bf16.msra.mxu1 %v1595_v13  ;;  %1297 = vmatpush3.bf16.msra.mxu0 %v1581_v7 }
  0x20   :  { %1277 = vmatprep.subr.bf16.mxu1 %v1534_v0  ;;  %1298 = vmatprep.subr.bf16.mxu0 %v1534_v0  ;;  %p1512_p11 = por %p1511_p10, %p1510_p9 }
  0x21   :  { %982 = vmatprep.mubr.msk.f32.mxu0 %vm53_vm2, %v41_v31 }
  0x22   :  { %983 = vmatmul.mubr.msk.f32.gmra.mrb[4].mxu0 %vm53_vm2, %v42_v32  ;;  %p1513_p12 = pnand %p1512_p11, %p1506_p8 }
  0x23   :  { %1279 = vmatpush3.bf16.msra.mxu1 %v1603_v16  ;;  %1300 = vmatpush3.bf16.msra.mxu0 %v1595_v13 }
  0x24   :  { %1280 = vmatprep.subr.bf16.mxu1 %v1534_v0  ;;  %1301 = vmatprep.subr.bf16.mxu0 %v1534_v0 }
  0x25   :  { %985 = vmatprep.mubr.msk.f32.mxu0 %vm53_vm2, %v43_v33 }
  0x26   :  { %986 = vmatmul.mubr.msk.f32.gmra.mrb[6].mxu0 %vm53_vm2, %v44_v34 }
  0x27   :  { %1282 = vmatpush3.bf16.msra.mxu1 %v1609_v19  ;;  %1303 = vmatpush3.bf16.msra.mxu0 %v1603_v16 }
  0x28   :  { %1283 = vmatprep.subr.bf16.mxu1 %v1534_v0  ;;  %1304 = vmatprep.subr.bf16.mxu0 %v1534_v0 }
  0x29   :  { %1055 = vmatprep.mubr.msk.f32.mxu0 %vm1535_vm0, %v1536_v1 }
  0x2b   :  { %1285 = vmatpush3.bf16.msra.mxu1 %v1615_v22  ;;  %1306 = vmatpush3.bf16.msra.mxu0 %v1609_v19 }
  0x2c   :  { %1286 = vmatprep.subr.bf16.mxu1 %v1534_v0  ;;  %1307 = vmatprep.subr.bf16.mxu0 %v1534_v0 }
  0x2f   :  { %1288 = vmatpush3.bf16.msra.mxu1 %v1621_v25  ;;  %1309 = vmatpush3.bf16.msra.mxu0 %v1615_v22 }
  0x30   :  { %1289 = vmatprep.subr.bf16.mxu1 %v1534_v0  ;;  %1310 = vmatprep.subr.bf16.mxu0 %v1534_v0 }
  0x33   :  { %1291 = vmatpush3.bf16.msra.mxu1 %v1627_v28  ;;  %1312 = vmatpush3.bf16.msra.mxu0 %v1621_v25 }
  0x34   :  { %1316 = vmatprep.subr.bf16.mxu1 %v1534_v0  ;;  %1313 = vmatprep.subr.bf16.mxu0 %v1534_v0 }
  0x36   :  { %1021 = vmatmul.mubr.f32.vlgmr.msra.gmra.mrb[0].mxu1 %v1536_v1 }
  0x37   :  { %1318 = vmatpush3.bf16.msra.mxu1 %v1578_v5  ;;  %1090 = vmatprep.mubr.msk.f32.mxu1 %vm1535_vm0, %v1536_v1 }
  0x38   :  { %1319 = vmatprep.subr.bf16.mxu1 %v1534_v0  ;;  %1315 = vmatpush3.bf16.msra.mxu0 %v1627_v28 }
  0x39   :  { %1340 = vmatprep.subr.bf16.mxu0 %v1534_v0 }
  0x3b   :  { %1321 = vmatpush3.bf16.msra.mxu1 %v1581_v7 }
  0x3c   :  { %1322 = vmatprep.subr.bf16.mxu1 %v1534_v0 }
  0x3f   :  { %1324 = vmatpush3.bf16.msra.mxu1 %v1595_v13 }
  0x40   :  { %1325 = vmatprep.subr.bf16.mxu1 %v1534_v0 }
  0x43   :  { %1327 = vmatpush3.bf16.msra.mxu1 %v1603_v16 }
  0x44   :  { %1328 = vmatprep.subr.bf16.mxu1 %v1534_v0 }
  0x47   :  { %1330 = vmatpush3.bf16.msra.mxu1 %v1609_v19 }
  0x48   :  { %1331 = vmatprep.subr.bf16.mxu1 %v1534_v0 }
  0x4b   :  { %1333 = vmatpush3.bf16.msra.mxu1 %v1615_v22 }
  0x4c   :  { %1334 = vmatprep.subr.bf16.mxu1 %v1534_v0 }
  0x4f   :  { %1336 = vmatpush3.bf16.msra.mxu1 %v1621_v25 }
  0x50   :  { %1337 = vmatprep.subr.bf16.mxu1 %v1534_v0 }
  0x53   :  { %1339 = vmatpush3.bf16.msra.mxu1 %v1627_v28 }
  0x54   :  { %1364 = vmatprep.subr.bf16.mxu1 %v1534_v0 }
  0xed   :  { %v978_v35 = vpop.f32.mrb[0].mxu0 }
  0xee   :  { %v148_v36 = vpop.f32.mrb[1].mxu0  ;;  %v154_v49 = vadd.f32 %v978_v35, %v1686_v37 }
  0xef   :  { %v149_v38 = vadd.f32 %v1686_v37, %v148_v36 }
  0xf1   :  { %v981_v43 = vpop.f32.mrb[2].mxu0 }
  0xf2   :  { %v158_v44 = vpop.f32.mrb[3].mxu0  ;;  %v164_v59 = vadd.f32 %v981_v43, %v1686_v37 }
  0xf3   :  { %v159_v54 = vadd.f32 %v1686_v37, %v158_v44 }
  0xf5   :  { %v1707_v45 = vpop.f32.mrb[4].mxu0 }
  0xf6   :  { %v1709_v46 = vpop.f32.mrb[5].mxu0 }
  0xf7   :  { %v169_v2 = vadd.f32 %v1686_v37, %v1709_v46 }
  0xf9   :  { %v1711_v47 = vpop.f32.mrb[6].mxu0 }
  0xfa   :  { %v1713_v48 = vpop.f32.mrb[7].mxu0 }
  0xfb   :  { %v179_v11 = vadd.f32 %v1686_v37, %v1713_v48 }
 0x109   :  { %v279_v39 = vpop.f32.mrb[0].mxu1 }
 0x10a   :  { %v283_v40 = vadd.f32 %v279_v39, %v149_v38  ;;  %v1022_v41 = vpop.f32.mrb[1].mxu1 }
 0x10c   :  { %1467 = vtanh.f32 %v283_v40 }
 0x116   :  { %v1468_v42 = vpop.eup %1467 }
 0x117   :  { %1056 = vmatmul.mubr.f32.vlgmr.msra.gmra.mrb[8].mxu0 %v1468_v42 }
 0x118   :  { %1342 = vmatpush3.bf16.msra.mxu0 %v1578_v5  ;;  %1125 = vmatprep.mubr.msk.f32.mxu0 %vm1535_vm0, %v1536_v1 }
 0x119   :  { %1343 = vmatprep.subr.bf16.mxu0 %v1534_v0 }
 0x11c   :  { %1345 = vmatpush3.bf16.msra.mxu0 %v1581_v7 }
 0x11d   :  { %1346 = vmatprep.subr.bf16.mxu0 %v1534_v0 }
 0x120   :  { %1348 = vmatpush3.bf16.msra.mxu0 %v1595_v13 }
 0x121   :  { %1349 = vmatprep.subr.bf16.mxu0 %v1534_v0 }
 0x124   :  { %1351 = vmatpush3.bf16.msra.mxu0 %v1603_v16 }
 0x125   :  { %1352 = vmatprep.subr.bf16.mxu0 %v1534_v0 }
 0x128   :  { %1354 = vmatpush3.bf16.msra.mxu0 %v1609_v19 }
 0x129   :  { %1355 = vmatprep.subr.bf16.mxu0 %v1534_v0 }
 0x12c   :  { %1357 = vmatpush3.bf16.msra.mxu0 %v1615_v22 }
 0x12d   :  { %1358 = vmatprep.subr.bf16.mxu0 %v1534_v0 }
 0x130   :  { %1360 = vmatpush3.bf16.msra.mxu0 %v1621_v25 }
 0x131   :  { %1361 = vmatprep.subr.bf16.mxu0 %v1534_v0 }
 0x134   :  { %1363 = vmatpush3.bf16.msra.mxu0 %v1627_v28 }
 0x135   :  { %1388 = vmatprep.subr.bf16.mxu0 %v1534_v0 }
 0x1ea   :  { %v353_v50 = vpop.f32.mrb[8].mxu0 }
 0x1eb   :  { %v357_v51 = vadd.f32 %v353_v50, %v154_v49  ;;  %v1057_v52 = vpop.f32.mrb[9].mxu0 }
 0x1ed   :  { %1469 = vtanh.f32 %v357_v51 }
 0x1f7   :  { %v1470_v53 = vpop.eup %1469 }
 0x1f8   :  { %1091 = vmatmul.mubr.f32.vlgmr.msra.gmra.mrb[2].mxu1 %v1470_v53 }
 0x1f9   :  { %1366 = vmatpush3.bf16.msra.mxu1 %v1578_v5  ;;  %1160 = vmatprep.mubr.msk.f32.mxu1 %vm1535_vm0, %v1536_v1 }
 0x1fa   :  { %1367 = vmatprep.subr.bf16.mxu1 %v1534_v0 }
 0x1fd   :  { %1369 = vmatpush3.bf16.msra.mxu1 %v1581_v7 }
 0x1fe   :  { %1370 = vmatprep.subr.bf16.mxu1 %v1534_v0 }
 0x201   :  { %1372 = vmatpush3.bf16.msra.mxu1 %v1595_v13 }
 0x202   :  { %1373 = vmatprep.subr.bf16.mxu1 %v1534_v0 }
 0x205   :  { %1375 = vmatpush3.bf16.msra.mxu1 %v1603_v16 }
 0x206   :  { %1376 = vmatprep.subr.bf16.mxu1 %v1534_v0 }
 0x209   :  { %1378 = vmatpush3.bf16.msra.mxu1 %v1609_v19 }
 0x20a   :  { %1379 = vmatprep.subr.bf16.mxu1 %v1534_v0 }
 0x20d   :  { %1381 = vmatpush3.bf16.msra.mxu1 %v1615_v22 }
 0x20e   :  { %1382 = vmatprep.subr.bf16.mxu1 %v1534_v0 }
 0x211   :  { %1384 = vmatpush3.bf16.msra.mxu1 %v1621_v25 }
 0x212   :  { %1385 = vmatprep.subr.bf16.mxu1 %v1534_v0 }
 0x215   :  { %1387 = vmatpush3.bf16.msra.mxu1 %v1627_v28 }
 0x216   :  { %1412 = vmatprep.subr.bf16.mxu1 %v1534_v0 }
 0x2cb   :  { %v427_v55 = vpop.f32.mrb[2].mxu1 }
 0x2cc   :  { %v431_v56 = vadd.f32 %v427_v55, %v159_v54  ;;  %v1092_v57 = vpop.f32.mrb[3].mxu1 }
 0x2ce   :  { %1471 = vtanh.f32 %v431_v56 }
 0x2d8   :  { %v1472_v58 = vpop.eup %1471 }
 0x2d9   :  { %1126 = vmatmul.mubr.f32.vlgmr.msra.gmra.mrb[10].mxu0 %v1472_v58 }
 0x2da   :  { %1390 = vmatpush3.bf16.msra.mxu0 %v1578_v5  ;;  %1195 = vmatprep.mubr.msk.f32.mxu0 %vm1535_vm0, %v1536_v1 }
 0x2db   :  { %1391 = vmatprep.subr.bf16.mxu0 %v1534_v0 }
 0x2de   :  { %1393 = vmatpush3.bf16.msra.mxu0 %v1581_v7 }
 0x2df   :  { %1394 = vmatprep.subr.bf16.mxu0 %v1534_v0 }
 0x2e2   :  { %1396 = vmatpush3.bf16.msra.mxu0 %v1595_v13 }
 0x2e3   :  { %1397 = vmatprep.subr.bf16.mxu0 %v1534_v0 }
 0x2e6   :  { %1399 = vmatpush3.bf16.msra.mxu0 %v1603_v16 }
 0x2e7   :  { %1400 = vmatprep.subr.bf16.mxu0 %v1534_v0 }
 0x2ea   :  { %1402 = vmatpush3.bf16.msra.mxu0 %v1609_v19 }
 0x2eb   :  { %1403 = vmatprep.subr.bf16.mxu0 %v1534_v0 }
 0x2ee   :  { %1405 = vmatpush3.bf16.msra.mxu0 %v1615_v22 }
 0x2ef   :  { %1406 = vmatprep.subr.bf16.mxu0 %v1534_v0 }
 0x2f2   :  { %1408 = vmatpush3.bf16.msra.mxu0 %v1621_v25 }
 0x2f3   :  { %1409 = vmatprep.subr.bf16.mxu0 %v1534_v0 }
 0x2f6   :  { %1411 = vmatpush3.bf16.msra.mxu0 %v1627_v28 }
 0x2f7   :  { %1436 = vmatprep.subr.bf16.mxu0 %v1534_v0 }
 0x3ac   :  { %v501_v60 = vpop.f32.mrb[10].mxu0 }
 0x3ad   :  { %v505_v61 = vadd.f32 %v501_v60, %v164_v59  ;;  %v1127_v62 = vpop.f32.mrb[11].mxu0 }
 0x3af   :  { %1473 = vtanh.f32 %v505_v61 }
 0x3b9   :  { %v1474_v63 = vpop.eup %1473 }
 0x3ba   :  { %1161 = vmatmul.mubr.f32.vlgmr.msra.gmra.mrb[4].mxu1 %v1474_v63 }
 0x3bb   :  { %1414 = vmatpush3.bf16.msra.mxu1 %v1578_v5  ;;  %1230 = vmatprep.mubr.msk.f32.mxu1 %vm1535_vm0, %v1536_v1 }
 0x3bc   :  { %1415 = vmatprep.subr.bf16.mxu1 %v1534_v0 }
 0x3bf   :  { %1417 = vmatpush3.bf16.msra.mxu1 %v1581_v7 }
 0x3c0   :  { %1418 = vmatprep.subr.bf16.mxu1 %v1534_v0 }
 0x3c3   :  { %1420 = vmatpush3.bf16.msra.mxu1 %v1595_v13 }
 0x3c4   :  { %1421 = vmatprep.subr.bf16.mxu1 %v1534_v0 }
 0x3c7   :  { %1423 = vmatpush3.bf16.msra.mxu1 %v1603_v16 }
 0x3c8   :  { %1424 = vmatprep.subr.bf16.mxu1 %v1534_v0 }
 0x3cb   :  { %1426 = vmatpush3.bf16.msra.mxu1 %v1609_v19 }
 0x3cc   :  { %1427 = vmatprep.subr.bf16.mxu1 %v1534_v0 }
 0x3cf   :  { %1429 = vmatpush3.bf16.msra.mxu1 %v1615_v22 }
 0x3d0   :  { %1430 = vmatprep.subr.bf16.mxu1 %v1534_v0 }
 0x3d3   :  { %1432 = vmatpush3.bf16.msra.mxu1 %v1621_v25 }
 0x3d4   :  { %1433 = vmatprep.subr.bf16.mxu1 %v1534_v0 }
 0x3d7   :  { %1435 = vmatpush3.bf16.msra.mxu1 %v1627_v28 }
 0x48d   :  { %v575_v3 = vpop.f32.mrb[4].mxu1 }
 0x48e   :  { %v579_v4 = vadd.f32 %v575_v3, %v169_v2  ;;  %v1162_v6 = vpop.f32.mrb[5].mxu1 }
 0x490   :  { %1475 = vtanh.f32 %v579_v4 }
 0x49a   :  { %v1476_v8 = vpop.eup %1475 }
 0x49b   :  { %1196 = vmatmul.mubr.f32.vlgmr.msra.gmra.mrb[12].mxu0 %v1476_v8 }
 0x49c   :  { %1438 = vmatpush3.bf16.msra.mxu0 %v1578_v5  ;;  %1265 = vmatprep.mubr.msk.f32.mxu0 %vm1535_vm0, %v1536_v1  ;;  %v174_v1 = vadd.f32 %v1707_v45, %v1686_v37 }
 0x49d   :  { %1439 = vmatprep.subr.bf16.mxu0 %v1534_v0 }
 0x4a0   :  { %1441 = vmatpush3.bf16.msra.mxu0 %v1581_v7 }
 0x4a1   :  { %1442 = vmatprep.subr.bf16.mxu0 %v1534_v0 }
 0x4a4   :  { %1444 = vmatpush3.bf16.msra.mxu0 %v1595_v13 }
 0x4a5   :  { %1445 = vmatprep.subr.bf16.mxu0 %v1534_v0 }
 0x4a8   :  { %1447 = vmatpush3.bf16.msra.mxu0 %v1603_v16 }
 0x4a9   :  { %1448 = vmatprep.subr.bf16.mxu0 %v1534_v0 }
 0x4ac   :  { %1450 = vmatpush3.bf16.msra.mxu0 %v1609_v19 }
 0x4ad   :  { %1451 = vmatprep.subr.bf16.mxu0 %v1534_v0 }
 0x4b0   :  { %1453 = vmatpush3.bf16.msra.mxu0 %v1615_v22 }
 0x4b1   :  { %1454 = vmatprep.subr.bf16.mxu0 %v1534_v0 }
 0x4b4   :  { %1456 = vmatpush3.bf16.msra.mxu0 %v1621_v25 }
 0x4b5   :  { %1457 = vmatprep.subr.bf16.mxu0 %v1534_v0  ;;  %v184_v0 = vadd.f32 %v1711_v47, %v1686_v37 }
 0x4b8   :  { %1459 = vmatpush3.bf16.msra.mxu0 %v1627_v28 }
 0x56e   :  { %v649_v5 = vpop.f32.mrb[12].mxu0 }
 0x56f   :  { %v653_v7 = vadd.f32 %v649_v5, %v174_v1  ;;  %v1197_v9 = vpop.f32.mrb[13].mxu0 }
 0x571   :  { %1477 = vtanh.f32 %v653_v7 }
 0x57b   :  { %v1478_v10 = vpop.eup %1477 }
 0x57c   :  { %1231 = vmatmul.mubr.f32.vlgmr.msra.gmra.mrb[6].mxu1 %v1478_v10 }
 0x64f   :  { %v723_v12 = vpop.f32.mrb[6].mxu1 }
 0x650   :  { %v727_v13 = vadd.f32 %v723_v12, %v179_v11  ;;  %v1232_v14 = vpop.f32.mrb[7].mxu1 }
 0x652   :  { %1479 = vtanh.f32 %v727_v13 }
 0x65c   :  { %v1480_v15 = vpop.eup %1479 }
 0x65d   :  { %1266 = vmatmul.mubr.f32.vlgmr.msra.gmra.mrb[14].mxu0 %v1480_v15 }
 0x730   :  { %v797_v16 = vpop.f32.mrb[14].mxu0 }
 0x731   :  { %v801_v17 = vadd.f32 %v797_v16, %v184_v0  ;;  %v1267_v18 = vpop.f32.mrb[15].mxu0 }
 0x733   :  { %1481 = vtanh.f32 %v801_v17 }
 0x73d   :  { %v1482_v19 = vpop.eup %1481 }
 0x73e   :  { %803 = vst [vmem:[#allocation6] sm:$0xff] %v1482_v19 }
 0x73f   :  { %1516 = shalt.err (!%p1513_p12)
}
 0x740   :  { %s1517_s24 = scalar_lea.hbm %s1812_s4, 128 }
 0x741   :  { %p1518_p13 = scmp.ne.s32.totalorder %s1812_s4, %s1517_s24  ;;  %p1521_p0 = scmp.lt.u32.totalorder %s1517_s24, %s1812_s4 }
 0x743   :  { %p1523_p1 = pnand %p1521_p0, %p1518_p13 }
 0x745   :  { %1526 = shalt.err (!%p1523_p1)
}
 0x746   :  { %813 = dma.vmem_to_hbm [thread:$0]  %s811_s3, 128, %s1812_s4, [#allocation5]  }
 0x747   :  { %1529 = dma.done.wait [#allocation5], 128  }
 0x748   :  { %1530 = vsyncadd [#allocation5], 4294967168 }
 0x749   :  { %817 = vsyncpa [#allocation4], 1 }
 0x74a   :  { %818 = vsyncpa [#allocation5], 1 }

</bundles_post_ra>
